<compile_context>
chip_gen: v7x
topology: tpu7x:2x2x1
jax: 0.10.0
libtpu: 0.0.40
codegen_flags: <defaults>
</compile_context>

<pallas_src>
import functools

import numpy as np
import jax
import jax.numpy as jnp
from jax.experimental import pallas as pl
from jax.experimental.pallas import tpu as pltpu

NCLASSES = 20
ERRORS_PIXEL_TILE = 32768     # kernel A pixels per grid step (lane axis)
REDUCE_PIXEL_TILE = 512       # kernel B pixels per grid step (carried cumsum)


# ---------------------------------------------------------------------------
# Kernel A: per-class negated errors and foreground masks (lane-dense).
# ---------------------------------------------------------------------------
def _errors_fg_kernel(p_ref, lab_ref, nerr_ref, fg_ref, *, ignore_index):
    p = p_ref[0]                                   # [C, T] f32, pixels on lanes
    lab = lab_ref[0]                               # [1, T] i32
    c, t = p.shape

    class_ids = jax.lax.broadcasted_iota(jnp.int32, (c, t), 0)
    validf = (lab != ignore_index).astype(jnp.float32)        # [1, T]
    onehot = (class_ids == lab).astype(jnp.float32)           # [C, T]

    fg = onehot * validf                                      # ignored -> 0
    nerr = -jnp.abs(fg - p) * validf                          # ignored -> 0

    nerr_ref[0] = nerr                                        # f32 keys
    fg_ref[0] = fg.astype(jnp.bfloat16)                       # exact 0/1 payload


# ---------------------------------------------------------------------------
# Kernel B: tiled Lovasz gradient + dot with carried prefix sum, per image.
# ---------------------------------------------------------------------------
def _lovasz_reduce_kernel(tri_ref, gts_ref, nerr_ref, fg_ref, out_ref,
                          cs_carry, acc):
    t = pl.program_id(1)
    nt = pl.num_programs(1)

    @pl.when(t == 0)
    def _():
        cs_carry[...] = jnp.zeros_like(cs_carry)
        acc[...] = jnp.zeros_like(acc)

    e = -nerr_ref[0]                               # [C, TP] errors, desc-sorted
    f16 = fg_ref[0]                                # [C, TP] bf16 in {0, 1}
    f = f16.astype(jnp.float32)
    gts = gts_ref[0]                               # [C, 1] total fg per class
    c, tp = e.shape

    # In-tile inclusive prefix sum via exact 0/1 bf16 matmul (f32 accumulate),
    # offset by the carried cumsum from previous pixel tiles.
    # TODO(synk): M = C = 20 under-fills the MXU; folding several images per
    # step (or an XLU log-step roll scan) would raise MXU utilization further.
    cs = cs_carry[...] + jnp.dot(f16, tri_ref[...],
                                 preferred_element_type=jnp.float32)  # [C, TP]

    pos = (jax.lax.broadcasted_iota(jnp.int32, (c, tp), 1)
           + 1 + t * tp).astype(jnp.float32)       # global 1-based position

    union = gts + pos - cs                         # >= max(gts, pos) >= 1
    jaccard = 1.0 - (gts - cs) / union             # [C, TP]

    # jaccard at position pos-1, rebuilt shift-free from prefix sums.
    prev_cs = cs - f
    prev_union = jnp.maximum(gts + (pos - 1.0) - prev_cs, 1.0)  # 0/0 guard @pos==1
    jac_prev = jnp.where(pos <= 1.0, 0.0, 1.0 - (gts - prev_cs) / prev_union)
    jd = jaccard - jac_prev                        # Lovasz gradient (Alg. 1)

    acc[...] += jnp.sum(e * jd, axis=-1, keepdims=True)         # [C, 1]
    cs_carry[...] += jnp.sum(f, axis=-1, keepdims=True)

    @pl.when(t == nt - 1)
    def _():
        present = (gts > 0.0).astype(jnp.float32)                # classes='present'
        n_present = jnp.sum(present)
        out_ref[0, 0, 0] = (jnp.sum(acc[...] * present)
                            / jnp.maximum(n_present, 1.0))


# ---------------------------------------------------------------------------
# Wrapper
# ---------------------------------------------------------------------------
def lovasz_loss(predicts, targets, *, ignore_index=0, reduction="mean"):
    """predicts: [B, C, H, W] class probabilities; targets: [B, H, W] int labels.

    Per-image multi-class Lovasz-Softmax over 'present' classes with a void
    label, averaged over images -- same as Lovasz_loss.forward.  (`reduction`
    is accepted for parity with the module but, as in the PyTorch forward,
    unused.)
    """
    b, c, h, w = predicts.shape
    npix = h * w

    # Lane-dense layout: classes on sublanes, pixels on lanes.
    p = predicts.reshape(b, c, npix).astype(jnp.float32)
    lab = targets.reshape(b, 1, npix).astype(jnp.int32)

    lanes = pl.cdiv(npix, 128) * 128
    tile_b = min(REDUCE_PIXEL_TILE, lanes)                       # kernel B tile
    tile_a = min(ERRORS_PIXEL_TILE, pl.cdiv(npix, tile_b) * tile_b)  # kernel A tile
    npix_pad = pl.cdiv(npix, tile_a) * tile_a                    # mult. of both
    pad = npix_pad - npix
    if pad:
        # Padded pixels look like ignored pixels -> contribute nothing.
        p = jnp.pad(p, ((0, 0), (0, 0), (0, pad)))
        lab = jnp.pad(lab, ((0, 0), (0, 0), (0, pad)),
                      constant_values=ignore_index)

    # Explicit VMEM budgets (double-buffered blocks + headroom), so larger
    # tiles don't hit the 16/32 MiB scoped defaults.
    blk_a = (c * tile_a * 4) + (tile_a * 4) + (c * tile_a * 4) + (c * tile_a * 2)
    vmem_a = int(min(max(2 * blk_a + (8 << 20), 16 << 20), 48 << 20))

    nerr, fg = pl.pallas_call(
        functools.partial(_errors_fg_kernel, ignore_index=ignore_index),
        out_shape=(jax.ShapeDtypeStruct((b, c, npix_pad), jnp.float32),
                   jax.ShapeDtypeStruct((b, c, npix_pad), jnp.bfloat16)),
        grid_spec=pltpu.PrefetchScalarGridSpec(
            num_scalar_prefetch=0,
            grid=(b, npix_pad // tile_a),
            in_specs=[
                pl.BlockSpec((1, c, tile_a), lambda i, t: (i, 0, t)),
                pl.BlockSpec((1, 1, tile_a), lambda i, t: (i, 0, t)),
            ],
            out_specs=[
                pl.BlockSpec((1, c, tile_a), lambda i, t: (i, 0, t)),
                pl.BlockSpec((1, c, tile_a), lambda i, t: (i, 0, t)),
            ],
        ),
        compiler_params=pltpu.CompilerParams(
            dimension_semantics=("parallel", "parallel"),
            vmem_limit_bytes=vmem_a),
    )(p, lab)

    # Total foreground count per (image, class): needed by every pixel tile of
    # kernel B (Lovasz union term), so it is reduced once here (cheap XLA reduce).
    gts = jnp.sum(fg.astype(jnp.float32), axis=-1, keepdims=True)   # [B, C, 1]

    # TODO(synk): the per-(image, class) descending sort (torch.sort) has no
    # clean Pallas TPU equivalent (would need an in-kernel bitonic network);
    # it stays in XLA between the two Pallas kernels.  Sorting negated errors
    # ascending avoids extra full-array negation passes over HBM.
    nerr_s, fg_s = jax.lax.sort((nerr, fg), dimension=2, num_keys=1)

    # Upper-triangular 0/1 matrix (bf16, exact) for the in-tile prefix sum;
    # built once here and kept VMEM-resident via kernel B's constant index_map.
    tri = (jnp.arange(tile_b, dtype=jnp.int32)[:, None]
           <= jnp.arange(tile_b, dtype=jnp.int32)[None, :]).astype(jnp.bfloat16)

    blk_b = (tile_b * tile_b * 2) + (c * 4) + (c * tile_b * 4) + (c * tile_b * 2)
    vmem_b = int(min(max(2 * blk_b + (8 << 20), 16 << 20), 48 << 20))

    per_image = pl.pallas_call(
        _lovasz_reduce_kernel,
        out_shape=jax.ShapeDtypeStruct((b, 1, 1), jnp.float32),
        grid_spec=pltpu.PrefetchScalarGridSpec(
            num_scalar_prefetch=0,
            grid=(b, npix_pad // tile_b),
            in_specs=[
                pl.BlockSpec((tile_b, tile_b), lambda i, t: (0, 0)),   # tri (resident)
                pl.BlockSpec((1, c, 1), lambda i, t: (i, 0, 0)),       # gts
                pl.BlockSpec((1, c, tile_b), lambda i, t: (i, 0, t)),  # nerr sorted
                pl.BlockSpec((1, c, tile_b), lambda i, t: (i, 0, t)),  # fg sorted
            ],
            out_specs=pl.BlockSpec((1, 1, 1), lambda i, t: (i, 0, 0)),
            scratch_shapes=[pltpu.VMEM((c, 1), jnp.float32),   # carried cumsum
                            pltpu.VMEM((c, 1), jnp.float32)],  # per-class dot acc
        ),
        compiler_params=pltpu.CompilerParams(
            dimension_semantics=("parallel", "arbitrary"),
            vmem_limit_bytes=vmem_b),
    )(tri, gts, nerr_s, fg_s)

    return jnp.sum(per_image) / b   # per-image mean


# ---------------------------------------------------------------------------
# Pure NumPy reference mirroring the PyTorch module.
# ---------------------------------------------------------------------------
def _ref_lovasz_loss(predicts, targets, *, ignore_index=0):
    probas = np.asarray(predicts, dtype=np.float32)
    labels = np.asarray(targets)
    bsz, c, _, _ = probas.shape
    per_image = []
    for b in range(bsz):
        p = probas[b].reshape(c, -1).T              # [P, C]
        lab = labels[b].reshape(-1)
        valid = lab != ignore_index
        vp = p[valid]
        vl = lab[valid]
        class_losses = []
        for cls in range(c):
            fg = (vl == cls).astype(np.float32)
            if fg.sum() == 0:                       # classes='present'
                continue
            errors = np.abs(fg - vp[:, cls])
            order = np.argsort(-errors, kind="stable")
            e_s = errors[order]
            fg_s = fg[order]
            gts = fg_s.sum()
            inter = gts - np.cumsum(fg_s)
            union = gts + np.cumsum(1.0 - fg_s)
            jacc = 1.0 - inter / union
            if len(jacc) > 1:
                jacc[1:] = jacc[1:] - jacc[:-1]
            class_losses.append(float(np.dot(e_s, jacc)))
        per_image.append(sum(class_losses) / len(class_losses)
                         if class_losses else 0.0)
    return sum(per_image) / len(per_image)


if __name__ == "__main__":
    key = jax.random.PRNGKey(0)
    k1, k2 = jax.random.split(key)

    B, C, H, W = 2, NCLASSES, 16, 16
    # Class probabilities in (0, 1) (e.g. softmax outputs), labels in [0, C);
    # label 0 doubles as the void / ignore class (module default).
    predicts = jax.random.uniform(k1, (B, C, H, W), dtype=jnp.float32,
                                  minval=0.01, maxval=0.99)
    targets = jax.random.randint(k2, (B, H, W), 0, C, dtype=jnp.int32)

    out = lovasz_loss(predicts, targets, ignore_index=0)
    out = jax.block_until_ready(out)

    ref = _ref_lovasz_loss(predicts, targets, ignore_index=0)
    assert np.isclose(float(out), float(ref), rtol=1e-4, atol=1e-5), \
        (float(out), float(ref))

    print("KERNEL_OK")
</pallas_src>

<mosaic_0001>
module attributes {stable_mosaic.version = 11 : i64} {
  func.func @_errors_fg_kernel(%arg0: i32, %arg1: i32, %arg2: memref<1x20x256xf32, #tpu.memory_space<vmem>>, %arg3: memref<1x1x256xi32, #tpu.memory_space<vmem>>, %arg4: memref<1x20x256xf32, #tpu.memory_space<vmem>>, %arg5: memref<1x20x256xbf16, #tpu.memory_space<vmem>>) attributes {dimension_semantics = [#tpu.dimension_semantics<parallel>, #tpu.dimension_semantics<parallel>], iteration_bounds = array<i64: 2, 1>, scalar_prefetch = 0 : i64, scratch_operands = 0 : i64, tpu.core_type = #tpu.core_type<tc>, window_params = [{transform_indices = @transform_0, window_bounds = array<i64: 1, 20, 256>}, {transform_indices = @transform_1, window_bounds = array<i64: 1, 1, 256>}, {transform_indices = @transform_2, window_bounds = array<i64: 1, 20, 256>}, {transform_indices = @transform_3, window_bounds = array<i64: 1, 20, 256>}]} {
    %c0 = arith.constant 0 : index
    %c0_0 = arith.constant 0 : index
    %c0_1 = arith.constant 0 : index
    %0 = vector.load %arg2[%c0, %c0_0, %c0_1] : memref<1x20x256xf32, #tpu.memory_space<vmem>>, vector<1x20x256xf32>
    %1 = vector.shape_cast %0 : vector<1x20x256xf32> to vector<20x256xf32>
    %c0_2 = arith.constant 0 : index
    %c0_3 = arith.constant 0 : index
    %c0_4 = arith.constant 0 : index
    %2 = vector.load %arg3[%c0_2, %c0_3, %c0_4] : memref<1x1x256xi32, #tpu.memory_space<vmem>>, vector<1x1x256xi32>
    %3 = vector.shape_cast %2 : vector<1x1x256xi32> to vector<1x256xi32>
    %4 = tpu.iota {dimensions = array<i32: 0>} : vector<20x256xi32>
    %c0_i32 = arith.constant 0 : i32
    %5 = vector.broadcast %c0_i32 : i32 to vector<1x256xi32>
    %6 = arith.cmpi ne, %3, %5 : vector<1x256xi32>
    %7 = arith.extui %6 : vector<1x256xi1> to vector<1x256xi32>
    %8 = arith.sitofp %7 : vector<1x256xi32> to vector<1x256xf32>
    %9 = vector.broadcast %3 : vector<1x256xi32> to vector<20x256xi32>
    %10 = arith.cmpi eq, %4, %9 : vector<20x256xi32>
    %11 = arith.extui %10 : vector<20x256xi1> to vector<20x256xi32>
    %12 = arith.sitofp %11 : vector<20x256xi32> to vector<20x256xf32>
    %13 = vector.broadcast %8 : vector<1x256xf32> to vector<20x256xf32>
    %14 = arith.mulf %12, %13 : vector<20x256xf32>
    %15 = arith.subf %14, %1 : vector<20x256xf32>
    %16 = math.absf %15 : vector<20x256xf32>
    %cst = arith.constant 0.000000e+00 : f32
    %17 = vector.broadcast %cst : f32 to vector<20x256xf32>
    %18 = arith.subf %17, %16 : vector<20x256xf32>
    %19 = vector.broadcast %8 : vector<1x256xf32> to vector<20x256xf32>
    %20 = arith.mulf %18, %19 : vector<20x256xf32>
    %c0_5 = arith.constant 0 : index
    %c0_6 = arith.constant 0 : index
    %c0_7 = arith.constant 0 : index
    %21 = vector.load %arg4[%c0_5, %c0_6, %c0_7] : memref<1x20x256xf32, #tpu.memory_space<vmem>>, vector<1x20x256xf32>
    %22 = vector.shape_cast %21 : vector<1x20x256xf32> to vector<20x256xf32>
    %23 = vector.shape_cast %20 : vector<20x256xf32> to vector<1x20x256xf32>
    tpu.vector_store %arg4[%c0_5, %c0_6, %c0_7], %23 {strides = array<i32>} : memref<1x20x256xf32, #tpu.memory_space<vmem>>, vector<1x20x256xf32>,
    %24 = arith.truncf %14 : vector<20x256xf32> to vector<20x256xbf16>
    %c0_8 = arith.constant 0 : index
    %c0_9 = arith.constant 0 : index
    %c0_10 = arith.constant 0 : index
    %25 = vector.load %arg5[%c0_8, %c0_9, %c0_10] : memref<1x20x256xbf16, #tpu.memory_space<vmem>>, vector<1x20x256xbf16>
    %26 = vector.shape_cast %25 : vector<1x20x256xbf16> to vector<20x256xbf16>
    %27 = vector.shape_cast %24 : vector<20x256xbf16> to vector<1x20x256xbf16>
    tpu.vector_store %arg5[%c0_8, %c0_9, %c0_10], %27 {strides = array<i32>} : memref<1x20x256xbf16, #tpu.memory_space<vmem>>, vector<1x20x256xbf16>,
    return
  }
  func.func @transform_0(%arg0: i32, %arg1: i32) -> (i32, i32, i32) {
    %c0_i32 = arith.constant 0 : i32
    %c0_i32_0 = arith.constant 0 : i32
    return %arg0, %c0_i32, %arg1 : i32, i32, i32
  }
  func.func @transform_1(%arg0: i32, %arg1: i32) -> (i32, i32, i32) {
    %c0_i32 = arith.constant 0 : i32
    %c0_i32_0 = arith.constant 0 : i32
    return %arg0, %c0_i32, %arg1 : i32, i32, i32
  }
  func.func @transform_2(%arg0: i32, %arg1: i32) -> (i32, i32, i32) {
    %c0_i32 = arith.constant 0 : i32
    %c0_i32_0 = arith.constant 0 : i32
    return %arg0, %c0_i32, %arg1 : i32, i32, i32
  }
  func.func @transform_3(%arg0: i32, %arg1: i32) -> (i32, i32, i32) {
    %c0_i32 = arith.constant 0 : i32
    %c0_i32_0 = arith.constant 0 : i32
    return %arg0, %c0_i32, %arg1 : i32, i32, i32
  }
}

</mosaic_0001>

<bundles_post_ra>
// kernel: tpu_custom_call.1
= control target key start
LH: loop header
LB: loop body
LE: loop exit
PB: predicated region body
PF: predicated region fallthrough
CT: control target
= control target key end

     0   :  { %s625_s12 = smov 0   ;;  %s627_s13 = smov 0   ;;  %s681_s0 = inlined_call_operand.vmem [shape: f32[2,20,256], index: 0, kind: input, shape index: {}]   ;;  %s682_s1 = inlined_call_operand.vmem [shape: s32[2,1,256], index: 1, kind: input, shape index: {}]   ;;  %s683_s2 = inlined_call_operand.vmem [shape: f32[2,20,256], index: 2, kind: output, shape index: {0}]   ;;  %s684_s3 = inlined_call_operand.vmem [shape: bf16[2,20,256], index: 3, kind: output, shape index: {1}]  }
   0x1   :  { %s629_s14 = smov 0  }
   0x2 LB: > { %s26_s15 = sadd.s32 1, %s598_s13  ;;  %p533_p0 = scmp.ge.s32.totalorder %s602_s14, 1  ;;  %s602_s14 = sphi %s629_s14, %s14_s14   ;;  %s598_s13 = sphi %s627_s13, %s686_s13   ;;  %s594_s12 = sphi %s625_s12, %s685_s12  }
   0x3   : > { %p28_p1 = scmp.ge.s32.totalorder %s26_s15, 2  ;;  %p179_p2 = scmp.lt.s32.totalorder %s602_s14, 3 }
   0x5   : > { %s688_s15 = smov (%p28_p1, %s26_s15), 0  ;;  %p180_p3 = pnand %p533_p0, %p179_p2 }
   0x6   : > { %p229_p4 = scmp.lt.s32.totalorder (!%p180_p3), %s594_s12, 1  ;;  %v274_v0 = vlaneseq (!%p180_p3)  ;;  %v604_v8 = vmov (!%p180_p3), 0.0  }
   0x7   : > { %183 = sbr.rel (%p180_p3) target bundleno = 36 (0x24), region = 28 }
   0x8   : > { %v275_v1 = vshrl.u32 (!%p180_p3), %v274_v0, 7 }
   0xa   : > { %v283_v2 = vsub.s32 (!%p180_p3), 0, %v275_v1  ;;  %v287_v3 = vsub.s32 (!%p180_p3), 1, %v275_v1  ;;  %v276_v5 = vadd.s32 (!%p180_p3), 8, %v275_v1  ;;  %v277_v10 = vadd.s32 (!%p180_p3), 16, %v275_v1 }
   0xe   : > { %s690_s12 = smov (!%p229_p4, %s594_s12), 1 }
   0xf   : > { %s553_s16 = smul.u32 48, %s690_s12  ;;  %s535_s17 = sshll.u32 %s690_s12, 1 }
  0x10   : > { %s245_s20 = scalar_lea.vmem %s682_s1, %s535_s17  ;;  %s554_s24 = smul.u32 24, %s690_s12 }
  0x11   : > { %v273_v4 = vld [vmem:[%s245_s20] sm:$0x3]  ;;  %s655_s23 = scalar_lea.vmem %s681_s0, %s553_s16  ;;  %s255_s30 = scalar_lea.vmem %s683_s2, %s553_s16 }
  0x12   : > { %vm278_vm0 = vcmp.ne.s32.totalorder %v273_v4, 0  ;;  %v284_v6 = vrot.slane %v273_v4, %v283_v2  ;;  %v288_v7 = vrot.slane %v273_v4, %v287_v3  ;;  %v267_v13 = vld [vmem:[%s655_s23] sm:$0xff]  ;;  %v268_v15 = vld [vmem:[%s655_s23 + $0x8] sm:$0xff]  ;;  %v269_v19 = vld [vmem:[%s655_s23 + $0x10] sm:$0xff]  ;;  %s265_s27 = scalar_lea.vmem %s684_s3, %s554_s24 }
  0x13   : > { %v538_v9 = vsel %vm278_vm0, 1.0, %v604_v8  ;;  %v270_v21 = vld [vmem:[%s655_s23 + $0x18] sm:$0xff]  ;;  %v271_v27 = vld [vmem:[%s655_s23 + $0x20] sm:$0xf]  ;;  %v272_v29 = vld [vmem:[%s655_s23 + $0x28] sm:$0xf] }
  0x14   : > { %vm289_vm1 = vcmp.eq.s32.totalorder %v275_v1, %v284_v6  ;;  %v311_v11 = vrot.slane %v538_v9, %v283_v2  ;;  %vm290_vm2 = vcmp.eq.s32.totalorder %v275_v1, %v288_v7  ;;  %v315_v12 = vrot.slane %v538_v9, %v287_v3 }
  0x15   : > { %v539_v14 = vsel %vm289_vm1, 1.0, %v604_v8  ;;  %v540_v16 = vsel %vm290_vm2, 1.0, %v604_v8  ;;  %vm291_vm3 = vcmp.eq.s32.totalorder %v276_v5, %v284_v6  ;;  %vm292_vm4 = vcmp.eq.s32.totalorder %v276_v5, %v288_v7 }
  0x16   : > { %v318_v17 = vmul.f32 %v539_v14, %v311_v11  ;;  %v319_v18 = vmul.f32 %v540_v16, %v315_v12  ;;  %v541_v20 = vsel %vm291_vm3, 1.0, %v604_v8  ;;  %v542_v22 = vsel %vm292_vm4, 1.0, %v604_v8 }
  0x17   : > { %v320_v23 = vmul.f32 %v541_v20, %v311_v11  ;;  %v321_v24 = vmul.f32 %v542_v22, %v315_v12  ;;  %vm293_vm5 = vcmp.eq.s32.totalorder %v277_v10, %v284_v6  ;;  %vm294_vm6 = vcmp.eq.s32.totalorder %v277_v10, %v288_v7 }
  0x18   : > { %v324_v25 = vsub.f32 %v318_v17, %v267_v13  ;;  %v325_v26 = vsub.f32 %v319_v18, %v268_v15  ;;  %v543_v28 = vsel %vm293_vm5, 1.0, %v604_v8  ;;  %v544_v30 = vsel %vm294_vm6, 1.0, %v604_v8 }
  0x19   : > { %v326_v31 = vsub.f32 %v320_v23, %v269_v19  ;;  %v327_v32 = vsub.f32 %v321_v24, %v270_v21  ;;  %v322_v33 = vmul.f32 %v543_v28, %v311_v11  ;;  %v323_v34 = vmul.f32 %v544_v30, %v315_v12 }
  0x1a   : > { %v330_v35 = vand.u32 2147483647, %v324_v25  ;;  %v331_v36 = vand.u32 2147483647, %v325_v26  ;;  %v550_v37 = vpack.c.bf16 %v319_v18, %v318_v17  ;;  %v551_v38 = vpack.c.bf16 %v321_v24, %v320_v23 }
  0x1b   : > { %v332_v39 = vand.u32 2147483647, %v326_v31  ;;  %v333_v40 = vand.u32 2147483647, %v327_v32  ;;  %v328_v41 = vsub.f32 %v322_v33, %v271_v27  ;;  %v329_v42 = vsub.f32 %v323_v34, %v272_v29 }
  0x1c   : > { %v336_v43 = vsub.f32 0.0, %v330_v35  ;;  %v337_v44 = vsub.f32 0.0, %v331_v36  ;;  %374 = vst [vmem:[%s265_s27] sm:$0xff] %v550_v37  ;;  %375 = vst [vmem:[%s265_s27 + $0x8] sm:$0xff] %v551_v38  ;;  %v552_v45 = vpack.c.bf16 %v323_v34, %v322_v33 }
  0x1d   : > { %v338_v46 = vsub.f32 0.0, %v332_v39  ;;  %v339_v47 = vsub.f32 0.0, %v333_v40  ;;  %v334_v48 = vand.u32 2147483647, %v328_v41  ;;  %v335_v49 = vand.u32 2147483647, %v329_v42 }
  0x1e   : > { %v342_v50 = vmul.f32 %v336_v43, %v311_v11  ;;  %v343_v51 = vmul.f32 %v337_v44, %v315_v12  ;;  %376 = vst [vmem:[%s265_s27 + $0x10] sm:$0x33] %v552_v45 }
  0x1f   : > { %v344_v52 = vmul.f32 %v338_v46, %v311_v11  ;;  %v345_v53 = vmul.f32 %v339_v47, %v315_v12  ;;  %v340_v54 = vsub.f32 0.0, %v334_v48  ;;  %v341_v55 = vsub.f32 0.0, %v335_v49 }
  0x20   : > { %348 = vst [vmem:[%s255_s30] sm:$0xff] %v342_v50  ;;  %349 = vst [vmem:[%s255_s30 + $0x8] sm:$0xff] %v343_v51 }
  0x21   : > { %350 = vst [vmem:[%s255_s30 + $0x10] sm:$0xff] %v344_v52  ;;  %351 = vst [vmem:[%s255_s30 + $0x18] sm:$0xff] %v345_v53  ;;  %v346_v56 = vmul.f32 %v340_v54, %v311_v11  ;;  %v347_v57 = vmul.f32 %v341_v55, %v315_v12 }
  0x23   : > { %352 = vst [vmem:[%s255_s30 + $0x20] sm:$0xf] %v346_v56  ;;  %353 = vst [vmem:[%s255_s30 + $0x28] sm:$0xf] %v347_v57 }
  0x24 PF: > { %s14_s14 = sadd.s32 1, %s602_s14   ;;  %s685_s12 = smov %s598_s13 }
  0x25   : > { %p11_p5 = scmp.ge.s32.totalorder %s14_s14, 4   ;;  %s686_s13 = smov %s688_s15 }
  0x27   :  { %13 = sbr.rel (!%p11_p5) target bundleno = 2 (0x2), region = 73 }

</bundles_post_ra>
